<compile_context>
chip_gen: v5e
topology: v5e:2x2
jax: 0.10.0
libtpu: 0.0.40
codegen_flags: <defaults>
</compile_context>

<pallas_src>
import functools

import jax
import jax.numpy as jnp
from jax.experimental import pallas as pl
from jax.experimental.pallas import tpu as pltpu


# bf16 operands for every MXU matmul (accumulation stays f32).  Set to None to
# keep exact f32 operand semantics of the reference module.
MXU_OPERAND_DTYPE = jnp.bfloat16


# ------------------------------ tiling helpers ------------------------------

def _round_up(x, m):
    return (x + m - 1) // m * m


def _pick_row_tile(M, target):
    """Row-tile: multiple of 8, preferably a divisor of M (avoids wrapper-side
    padding), capped at M/2 so 'parallel' grids have >= 2 steps (v7x 2 TCs)."""
    target = max(8, target // 8 * 8)
    if M <= 8:
        return _round_up(M, 8)
    cap = min(target, max(8, (M // 2) // 8 * 8))
    if M % 8 == 0:
        for t in range(cap, 7, -8):
            if M % t == 0:
                return t
    return cap  # ragged M -> wrapper pads (rare; M = B*H*W here)


# ----------------------------- fused linear block ---------------------------
#
# Stage 1:  y = x @ w1 + b1  [-> LayerNorm(post_ln1)]  [+ residual]   -> out1
# Stage 2:  z = LayerNorm(y; ln2)  [-> z @ w2 + b2]                   -> out2
#
# One row-tile of rows per grid step; weights / LN params stay resident.

def _fused_block_kernel(*refs, post_ln1, residual, stage2, stage2_matmul):
    it = iter(refs)
    x_ref = next(it)
    w1_ref = next(it)
    b1_ref = next(it)
    ln1_ref = next(it) if post_ln1 else None
    r_ref = next(it) if residual else None
    if stage2:
        ln2_ref = next(it)
        if stage2_matmul:
            w2_ref = next(it)
            b2_ref = next(it)
    o1_ref = next(it)
    if stage2:
        o2_ref = next(it)

    def _ln(v, p_ref):
        g = p_ref[0:1, :].astype(jnp.float32)
        b = p_ref[1:2, :].astype(jnp.float32)
        mu = jnp.mean(v, axis=-1, keepdims=True)
        var = jnp.mean(jnp.square(v - mu), axis=-1, keepdims=True)
        return (v - mu) * jax.lax.rsqrt(var + 1e-5) * g + b   # torch eps 1e-5

    x = x_ref[...]
    w1 = w1_ref[...]
    if MXU_OPERAND_DTYPE is not None:
        x = x.astype(MXU_OPERAND_DTYPE)
        w1 = w1.astype(MXU_OPERAND_DTYPE)
    y = jnp.dot(x, w1, preferred_element_type=jnp.float32)
    y = y + b1_ref[...].astype(jnp.float32)
    if post_ln1:
        y = _ln(y, ln1_ref)
    if residual:
        y = y + r_ref[...].astype(jnp.float32)
    # TODO(synk): present a lane-dense (M/4, 128) store slab for the C=32-wide
    # outputs to avoid masked vst.msk partial stores.
    o1_ref[...] = y.astype(o1_ref.dtype)

    if stage2:
        z = _ln(y, ln2_ref)
        if stage2_matmul:
            w2 = w2_ref[...]
            if MXU_OPERAND_DTYPE is not None:
                z = z.astype(MXU_OPERAND_DTYPE)
                w2 = w2.astype(MXU_OPERAND_DTYPE)
            z = jnp.dot(z, w2, preferred_element_type=jnp.float32)
            z = z + b2_ref[...].astype(jnp.float32)
        o2_ref[...] = z.astype(o2_ref.dtype)


def fused_block(x, w1, b1, *, residual=None, post_ln1=None, ln2=None,
                w2=None, b2=None, row_tile=512):
    """x: (M, K). Returns out1 (and out2 if ln2 is given)."""
    M, K = x.shape
    N1 = w1.shape[1]
    tm = _pick_row_tile(M, row_tile)
    Mp = _round_up(M, tm)
    if Mp != M:
        x = jnp.pad(x, ((0, Mp - M), (0, 0)))
        if residual is not None:
            residual = jnp.pad(residual, ((0, Mp - M), (0, 0)))

    stage2 = ln2 is not None
    stage2_matmul = w2 is not None

    inputs = [x, w1, b1.reshape(1, N1)]
    in_specs = [pl.BlockSpec((tm, K), lambda i: (i, 0)),
                pl.BlockSpec((K, N1), lambda i: (0, 0)),
                pl.BlockSpec((1, N1), lambda i: (0, 0))]
    if post_ln1 is not None:
        inputs.append(jnp.stack([post_ln1[0], post_ln1[1]]))      # (2, N1)
        in_specs.append(pl.BlockSpec((2, N1), lambda i: (0, 0)))
    if residual is not None:
        inputs.append(residual)
        in_specs.append(pl.BlockSpec((tm, N1), lambda i: (i, 0)))

    out_shapes = [jax.ShapeDtypeStruct((Mp, N1), x.dtype)]
    out_specs = [pl.BlockSpec((tm, N1), lambda i: (i, 0))]
    if stage2:
        inputs.append(jnp.stack([ln2[0], ln2[1]]))                # (2, N1)
        in_specs.append(pl.BlockSpec((2, N1), lambda i: (0, 0)))
        N2 = N1
        if stage2_matmul:
            N2 = w2.shape[1]
            inputs += [w2, b2.reshape(1, N2)]
            in_specs += [pl.BlockSpec((N1, N2), lambda i: (0, 0)),
                         pl.BlockSpec((1, N2), lambda i: (0, 0))]
        out_shapes.append(jax.ShapeDtypeStruct((Mp, N2), x.dtype))
        out_specs.append(pl.BlockSpec((tm, N2), lambda i: (i, 0)))

    kern = functools.partial(_fused_block_kernel,
                             post_ln1=post_ln1 is not None,
                             residual=residual is not None,
                             stage2=stage2, stage2_matmul=stage2_matmul)
    outs = pl.pallas_call(
        kern,
        out_shape=tuple(out_shapes) if stage2 else out_shapes[0],
        grid=(Mp // tm,),
        in_specs=in_specs,
        out_specs=out_specs if stage2 else out_specs[0],
        compiler_params=pltpu.CompilerParams(dimension_semantics=("parallel",)),
    )(*inputs)

    if stage2:
        o1, o2 = outs
        if Mp != M:
            o1, o2 = o1[:M], o2[:M]
        return o1, o2
    return outs[:M] if Mp != M else outs


# ------------------------------ flash attention ------------------------------

def _flash_attn_kernel(q_ref, k_ref, v_ref, o_ref, m_ref, l_ref, acc_ref, *,
                       scale, tk, nk_valid, need_mask):
    kv = pl.program_id(2)

    @pl.when(kv == 0)
    def _():
        m_ref[...] = jnp.full_like(m_ref, -jnp.inf)
        l_ref[...] = jnp.zeros_like(l_ref)
        acc_ref[...] = jnp.zeros_like(acc_ref)

    # Apply the softmax scale to q once per q-tile (tq*C mults) instead of to
    # s per kv step (tq*tk mults).
    q = q_ref[...].astype(jnp.float32) * scale
    k = k_ref[...]
    v = v_ref[...]
    if MXU_OPERAND_DTYPE is not None:
        q = q.astype(MXU_OPERAND_DTYPE)
        k = k.astype(MXU_OPERAND_DTYPE)
        v = v.astype(MXU_OPERAND_DTYPE)

    # q @ k^T without materializing a transpose of K (contract last dims).
    s = jax.lax.dot_general(q, k, (((1,), (1,)), ((), ())),
                            preferred_element_type=jnp.float32)
    if need_mask:
        col = jax.lax.broadcasted_iota(jnp.int32, s.shape, 1) + kv * tk
        s = jnp.where(col < nk_valid, s, -jnp.inf)

    # TODO(synk): on v6e/v7x compute exp on the bf16 EUP path (keep m/l/acc
    # rescaling f32) to relieve the single EUP slot at small head widths.
    m_prev = m_ref[...]
    m_new = jnp.maximum(m_prev, jnp.max(s, axis=-1, keepdims=True))
    alpha = jnp.exp(m_prev - m_new)
    p = jnp.exp(s - m_new)
    l_ref[...] = alpha * l_ref[...] + jnp.sum(p, axis=-1, keepdims=True)
    acc_ref[...] = alpha * acc_ref[...] + jnp.dot(
        p.astype(v.dtype), v, preferred_element_type=jnp.float32)
    m_ref[...] = m_new

    @pl.when(kv == pl.num_programs(2) - 1)
    def _():
        o_ref[...] = (acc_ref[...] * pl.reciprocal(l_ref[...], approx=True)
                      ).astype(o_ref.dtype)


def flash_attention(q, k, v, scale, *, q_tile=128, kv_tile=128):
    """q: (B, Nq, C), k/v: (B, Nk, C) -> (B, Nq, C).  Online softmax in VMEM;
    Nq/Nk are padded to tile multiples (padded kv columns masked with -inf)."""
    B, Nq, C = q.shape
    _, Nk, _ = k.shape
    tq = min(q_tile, _round_up(Nq, 8))
    tk = min(kv_tile, _round_up(Nk, 8))
    Nq_p, Nk_p = _round_up(Nq, tq), _round_up(Nk, tk)
    if Nq_p != Nq:
        q = jnp.pad(q, ((0, 0), (0, Nq_p - Nq), (0, 0)))
    if Nk_p != Nk:
        k = jnp.pad(k, ((0, 0), (0, Nk_p - Nk), (0, 0)))
        v = jnp.pad(v, ((0, 0), (0, Nk_p - Nk), (0, 0)))

    kern = functools.partial(_flash_attn_kernel, scale=scale, tk=tk,
                             nk_valid=Nk, need_mask=(Nk_p != Nk))
    out = pl.pallas_call(
        kern,
        out_shape=jax.ShapeDtypeStruct((B, Nq_p, C), q.dtype),
        grid=(B, Nq_p // tq, Nk_p // tk),
        in_specs=[pl.BlockSpec((None, tq, C), lambda b, i, j: (b, i, 0)),
                  pl.BlockSpec((None, tk, C), lambda b, i, j: (b, j, 0)),
                  pl.BlockSpec((None, tk, C), lambda b, i, j: (b, j, 0))],
        out_specs=pl.BlockSpec((None, tq, C), lambda b, i, j: (b, i, 0)),
        scratch_shapes=[pltpu.VMEM((tq, 1), jnp.float32),
                        pltpu.VMEM((tq, 1), jnp.float32),
                        pltpu.VMEM((tq, C), jnp.float32)],
        compiler_params=pltpu.CompilerParams(
            dimension_semantics=("parallel", "parallel", "arbitrary")),
    )(q, k, v)
    return out[:, :Nq] if Nq_p != Nq else out


# ----------------------- depthwise 3x3 conv + exact GELU ---------------------

def _dwconv_gelu_kernel(x_hbm, w_ref, b_ref, o_ref, xbuf, sem, *, bh, W):
    # Row-tiled with a 1-row halo: the (bh+2, W+2, F) band is DMA'd from HBM
    # into VMEM explicitly, so VMEM stays O(bh*W*F) at any image size.
    b = pl.program_id(0)
    i = pl.program_id(1)
    cp = pltpu.make_async_copy(x_hbm.at[b, pl.ds(i * bh, bh + 2)], xbuf, sem)
    cp.start()
    cp.wait()
    # TODO(synk): double-buffer the band DMA and use pltpu.roll-based shifts of
    # one resident tile instead of 9 overlapping slices.
    x = xbuf[...].astype(jnp.float32)            # (bh+2, W+2, F)
    w = w_ref[...].astype(jnp.float32)           # (9, F)
    F = x.shape[-1]
    acc = jnp.zeros((bh, W, F), jnp.float32)
    for ky in range(3):
        for kx in range(3):
            acc = acc + x[ky:ky + bh, kx:kx + W, :] * w[ky * 3 + kx, :]
    acc = acc + b_ref[...].astype(jnp.float32)
    o_ref[...] = jax.nn.gelu(acc, approximate=False).astype(o_ref.dtype)  # nn.GELU (exact)


def dwconv3x3_gelu(x, w, b, H, W):
    """Depthwise 3x3 conv (stride 1, pad 1) fused with exact GELU.
    x: (B, H, W, F) NHWC."""
    B, _, _, F = x.shape
    x_pad = jnp.pad(x, ((0, 0), (1, 1), (1, 1), (0, 0)))
    # Row tile: divisor of H keeping the input band around ~2 MiB of VMEM.
    bytes_per_row = (W + 2) * F * 4
    max_rows = max(1, (2 << 20) // max(1, bytes_per_row))
    bh = H
    if H > max_rows:
        for t in range(min(max_rows, H), 0, -1):
            if H % t == 0:
                bh = t
                break
    kern = functools.partial(_dwconv_gelu_kernel, bh=bh, W=W)
    return pl.pallas_call(
        kern,
        out_shape=jax.ShapeDtypeStruct((B, H, W, F), x.dtype),
        grid=(B, H // bh),
        in_specs=[pl.BlockSpec(memory_space=pl.ANY),
                  pl.BlockSpec((9, F), lambda b_, i: (0, 0)),
                  pl.BlockSpec((1, F), lambda b_, i: (0, 0))],
        out_specs=pl.BlockSpec((None, bh, W, F), lambda b_, i: (b_, i, 0, 0)),
        scratch_shapes=[pltpu.VMEM((bh + 2, W + 2, F), x.dtype),
                        pltpu.SemaphoreType.DMA(())],
        compiler_params=pltpu.CompilerParams(
            dimension_semantics=("parallel", "parallel")),
    )(x_pad, w, b.reshape(1, F))


# ------------------------------- JAX glue ----------------------------------

def im2col(x, k, s, pad):
    """x: (B, H, W, C) NHWC -> (B, Ho, Wo, k*k*C), flatten order (ky, kx, c).
    TODO(synk): fold this overlapping-patch gather into the patch-embed matmul
    via a BlockSpec/manual-DMA gather to avoid the k^2/stride^2 HBM inflation."""
    B, H, W, C = x.shape
    xp = jnp.pad(x, ((0, 0), (pad, pad), (pad, pad), (0, 0)))
    Ho = (H + 2 * pad - k) // s + 1
    Wo = (W + 2 * pad - k) // s + 1
    cols = []
    for ky in range(k):
        for kx in range(k):
            cols.append(xp[:, ky:ky + (Ho - 1) * s + 1:s,
                           kx:kx + (Wo - 1) * s + 1:s, :])
    patches = jnp.stack(cols, axis=3)          # (B, Ho, Wo, k*k, C)
    return patches.reshape(B, Ho, Wo, k * k * C)


def encoder_layer(x2d, xn2d, hw, B, p, next_ln, cfg):
    """One TransformerEncoderLayer.
    x2d: (B*N, C) residual stream;  xn2d = LN1(x2d) (produced by the previous
    fused block).  Returns (new residual stream, LN(new stream; next_ln))."""
    H, W = hw
    N = H * W
    C = cfg["embed"]
    Fh = cfg["ffn"]
    sr = cfg["sr_ratio"]
    scale = (C // cfg["num_heads"]) ** -0.5

    xn = xn2d.reshape(B, N, C)

    # ---- Efficient multi-head attention branch (pre-norm, residual add) ----
    if sr > 1:
        # spatial-reduction conv: kernel=stride=sr -> non-overlapping patches
        # TODO(synk): fold this rearrange into the sr fused_block's index_map.
        xk = xn.reshape(B, H // sr, sr, W // sr, sr, C)
        xk = xk.transpose(0, 1, 3, 2, 4, 5).reshape(
            B * (H // sr) * (W // sr), sr * sr * C)
        Nk = (H // sr) * (W // sr)
        xk = fused_block(xk, p["sr_w"], p["sr_b"],
                         post_ln1=(p["sr_ln_g"], p["sr_ln_b"]))
        xk = xk.reshape(B, Nk, C)
    else:
        xk = xn
    att = flash_attention(xn, xk, xk, scale)

    # proj + bias + residual, then ln2 + fc1 (+bias) -- one kernel, two outputs
    x_mid, h = fused_block(att.reshape(B * N, C), p["proj_w"], p["proj_b"],
                           residual=x2d,
                           ln2=(p["ln2_g"], p["ln2_b"]),
                           w2=p["fc1_w"], b2=p["fc1_b"])

    # ------------------------ MixFFN branch ------------------------
    h = dwconv3x3_gelu(h.reshape(B, H, W, Fh), p["dw_w"], p["dw_b"], H, W)
    # fc2 + bias + residual, then the next LN (next layer's ln1 or the final
    # stage LN) -- one kernel, two outputs
    x_new, xn_next = fused_block(h.reshape(B * N, Fh), p["fc2_w"], p["fc2_b"],
                                 residual=x_mid, ln2=next_ln)
    return x_new, xn_next


def layer_stage_forward(x_nchw, params, cfg):
    B = x_nchw.shape[0]
    C = cfg["embed"]
    x = jnp.transpose(x_nchw, (0, 2, 3, 1))                 # NCHW -> NHWC

    # PatchEmbed: overlapping conv as im2col + fused (matmul + bias + LN),
    # fused with the first consumer LN (layer 0 ln1, or the final LN).
    patches = im2col(x, cfg["patch"], cfg["stride"], cfg["patch"] // 2)
    _, Hp, Wp, KK = patches.shape
    layers = params["layers"]
    first_ln = ((layers[0]["ln1_g"], layers[0]["ln1_b"]) if layers else
                (params["final_ln_g"], params["final_ln_b"]))
    tok, xn = fused_block(patches.reshape(B * Hp * Wp, KK),
                          params["pe_w"], params["pe_b"],
                          post_ln1=(params["pe_ln_g"], params["pe_ln_b"]),
                          ln2=first_ln)

    x2d, xn2d = tok, xn
    for idx, lp in enumerate(layers):
        if idx + 1 < len(layers):
            next_ln = (layers[idx + 1]["ln1_g"], layers[idx + 1]["ln1_b"])
        else:
            next_ln = (params["final_ln_g"], params["final_ln_b"])
        x2d, xn2d = encoder_layer(x2d, xn2d, (Hp, Wp), B, lp, next_ln, cfg)

    # xn2d already holds the final-LayerNorm output (fused into the last block)
    out = xn2d.reshape(B, Hp, Wp, C).transpose(0, 3, 1, 2)   # NLC -> NCHW
    return out


# --------------------------- parameter creation -----------------------------

def init_params(key, cfg):
    C, Fh, sr = cfg["embed"], cfg["ffn"], cfg["sr_ratio"]
    Cin, k = cfg["in_ch"], cfg["patch"]
    keys = iter(jax.random.split(key, 64))

    def w(shape, scale=0.02):
        return (scale * jax.random.normal(next(keys), shape)).astype(jnp.float32)

    params = {
        "pe_w": w((k * k * Cin, C)), "pe_b": jnp.zeros((C,), jnp.float32),
        "pe_ln_g": jnp.ones((C,), jnp.float32), "pe_ln_b": jnp.zeros((C,), jnp.float32),
        "final_ln_g": jnp.ones((C,), jnp.float32), "final_ln_b": jnp.zeros((C,), jnp.float32),
        "layers": [],
    }
    for _ in range(cfg["num_layer"]):
        lp = {
            "ln1_g": jnp.ones((C,), jnp.float32), "ln1_b": jnp.zeros((C,), jnp.float32),
            "proj_w": w((C, C)), "proj_b": jnp.zeros((C,), jnp.float32),
            "ln2_g": jnp.ones((C,), jnp.float32), "ln2_b": jnp.zeros((C,), jnp.float32),
            "fc1_w": w((C, Fh)), "fc1_b": jnp.zeros((Fh,), jnp.float32),
            "dw_w": w((9, Fh)), "dw_b": jnp.zeros((Fh,), jnp.float32),
            "fc2_w": w((Fh, C)), "fc2_b": jnp.zeros((C,), jnp.float32),
        }
        if sr > 1:
            lp["sr_w"] = w((sr * sr * C, C))
            lp["sr_b"] = jnp.zeros((C,), jnp.float32)
            lp["sr_ln_g"] = jnp.ones((C,), jnp.float32)
            lp["sr_ln_b"] = jnp.zeros((C,), jnp.float32)
        params["layers"].append(lp)
    return params


# ---------------------------------- main ------------------------------------

if __name__ == "__main__":
    cfg = dict(
        in_ch=4,          # in_channels
        embed=32,         # embed_dims
        num_layer=2,
        patch=3,          # patch_size (padding = patch // 2 = 1)
        stride=2,
        num_heads=2,      # -> head_dim = 16, attn scale = 16 ** -0.5
        ffn=64,           # feedforward_channels
        sr_ratio=2,
    )
    key = jax.random.PRNGKey(0)
    kx, kp = jax.random.split(key)
    x = jax.random.normal(kx, (2, cfg["in_ch"], 16, 16), jnp.float32)   # NCHW input
    params = init_params(kp, cfg)

    out = layer_stage_forward(x, params, cfg)
    out = jax.block_until_ready(out)
    assert out.shape == (2, cfg["embed"], 8, 8), out.shape
    assert jnp.all(jnp.isfinite(out))
    print("KERNEL_OK")
</pallas_src>

<mosaic_0001>
module attributes {stable_mosaic.version = 11 : i64} {
  func.func @_fused_block_kernel(%arg0: i32, %arg1: memref<64x36xf32, #tpu.memory_space<vmem>>, %arg2: memref<36x32xf32, #tpu.memory_space<vmem>>, %arg3: memref<1x32xf32, #tpu.memory_space<vmem>>, %arg4: memref<2x32xf32, #tpu.memory_space<vmem>>, %arg5: memref<2x32xf32, #tpu.memory_space<vmem>>, %arg6: memref<64x32xf32, #tpu.memory_space<vmem>>, %arg7: memref<64x32xf32, #tpu.memory_space<vmem>>) attributes {dimension_semantics = [#tpu.dimension_semantics<parallel>], iteration_bounds = array<i64: 2>, scalar_prefetch = 0 : i64, scratch_operands = 0 : i64, tpu.core_type = #tpu.core_type<tc>, window_params = [{transform_indices = @transform_0, window_bounds = array<i64: 64, 36>}, {pipeline_mode = #tpu.pipeline_mode<synchronous>, transform_indices = @transform_1, window_bounds = array<i64: 36, 32>}, {pipeline_mode = #tpu.pipeline_mode<synchronous>, transform_indices = @transform_2, window_bounds = array<i64: 1, 32>}, {pipeline_mode = #tpu.pipeline_mode<synchronous>, transform_indices = @transform_3, window_bounds = array<i64: 2, 32>}, {pipeline_mode = #tpu.pipeline_mode<synchronous>, transform_indices = @transform_4, window_bounds = array<i64: 2, 32>}, {transform_indices = @transform_5, window_bounds = array<i64: 64, 32>}, {transform_indices = @transform_6, window_bounds = array<i64: 64, 32>}]} {
    %c0 = arith.constant 0 : index
    %c0_0 = arith.constant 0 : index
    %0 = vector.load %arg1[%c0, %c0_0] : memref<64x36xf32, #tpu.memory_space<vmem>>, vector<64x36xf32>
    %c0_1 = arith.constant 0 : index
    %c0_2 = arith.constant 0 : index
    %1 = vector.load %arg2[%c0_1, %c0_2] : memref<36x32xf32, #tpu.memory_space<vmem>>, vector<36x32xf32>
    %2 = arith.truncf %0 : vector<64x36xf32> to vector<64x36xbf16>
    %3 = arith.truncf %1 : vector<36x32xf32> to vector<36x32xbf16>
    %cst = arith.constant dense<0.000000e+00> : vector<64x32xf32>
    %4 = tpu.matmul %2, %3, %cst {dimension_numbers = #tpu.dot_dimension_numbers<[1], [0], [0], [1], [0, 0, 1, 1], [], []>} : vector<64x36xbf16>, vector<36x32xbf16>, vector<64x32xf32> -> vector<64x32xf32>
    %c0_3 = arith.constant 0 : index
    %c0_4 = arith.constant 0 : index
    %5 = vector.load %arg3[%c0_3, %c0_4] : memref<1x32xf32, #tpu.memory_space<vmem>>, vector<1x32xf32>
    %6 = vector.broadcast %5 : vector<1x32xf32> to vector<64x32xf32>
    %7 = arith.addf %4, %6 : vector<64x32xf32>
    %c0_5 = arith.constant 0 : index
    %c0_6 = arith.constant 0 : index
    %8 = vector.load %arg4[%c0_5, %c0_6] : memref<2x32xf32, #tpu.memory_space<vmem>>, vector<1x32xf32>
    %c1 = arith.constant 1 : index
    %c0_7 = arith.constant 0 : index
    %9 = vector.load %arg4[%c1, %c0_7] : memref<2x32xf32, #tpu.memory_space<vmem>>, vector<1x32xf32>
    %cst_8 = arith.constant dense<0.000000e+00> : vector<64xf32>
    %10 = vector.multi_reduction <add>, %7, %cst_8 [1] : vector<64x32xf32> to vector<64xf32>
    %11 = vector.shape_cast %10 : vector<64xf32> to vector<64x1xf32>
    %cst_9 = arith.constant 3.200000e+01 : f32
    %12 = vector.broadcast %cst_9 : f32 to vector<64x1xf32>
    %13 = arith.divf %11, %12 : vector<64x1xf32>
    %14 = vector.broadcast %13 : vector<64x1xf32> to vector<64x32xf32>
    %15 = arith.subf %7, %14 : vector<64x32xf32>
    %16 = arith.mulf %15, %15 : vector<64x32xf32>
    %cst_10 = arith.constant dense<0.000000e+00> : vector<64xf32>
    %17 = vector.multi_reduction <add>, %16, %cst_10 [1] : vector<64x32xf32> to vector<64xf32>
    %18 = vector.shape_cast %17 : vector<64xf32> to vector<64x1xf32>
    %cst_11 = arith.constant 3.200000e+01 : f32
    %19 = vector.broadcast %cst_11 : f32 to vector<64x1xf32>
    %20 = arith.divf %18, %19 : vector<64x1xf32>
    %21 = vector.broadcast %13 : vector<64x1xf32> to vector<64x32xf32>
    %22 = arith.subf %7, %21 : vector<64x32xf32>
    %cst_12 = arith.constant 9.99999974E-6 : f32
    %23 = vector.broadcast %cst_12 : f32 to vector<64x1xf32>
    %24 = arith.addf %20, %23 : vector<64x1xf32>
    %25 = math.rsqrt %24 : vector<64x1xf32>
    %26 = vector.broadcast %25 : vector<64x1xf32> to vector<64x32xf32>
    %27 = arith.mulf %22, %26 : vector<64x32xf32>
    %28 = vector.broadcast %8 : vector<1x32xf32> to vector<64x32xf32>
    %29 = arith.mulf %27, %28 : vector<64x32xf32>
    %30 = vector.broadcast %9 : vector<1x32xf32> to vector<64x32xf32>
    %31 = arith.addf %29, %30 : vector<64x32xf32>
    %c0_13 = arith.constant 0 : index
    %c0_14 = arith.constant 0 : index
    %32 = vector.load %arg6[%c0_13, %c0_14] : memref<64x32xf32, #tpu.memory_space<vmem>>, vector<64x32xf32>
    tpu.vector_store %arg6[%c0_13, %c0_14], %31 {strides = array<i32>} : memref<64x32xf32, #tpu.memory_space<vmem>>, vector<64x32xf32>,
    %c0_15 = arith.constant 0 : index
    %c0_16 = arith.constant 0 : index
    %33 = vector.load %arg5[%c0_15, %c0_16] : memref<2x32xf32, #tpu.memory_space<vmem>>, vector<1x32xf32>
    %c1_17 = arith.constant 1 : index
    %c0_18 = arith.constant 0 : index
    %34 = vector.load %arg5[%c1_17, %c0_18] : memref<2x32xf32, #tpu.memory_space<vmem>>, vector<1x32xf32>
    %cst_19 = arith.constant dense<0.000000e+00> : vector<64xf32>
    %35 = vector.multi_reduction <add>, %31, %cst_19 [1] : vector<64x32xf32> to vector<64xf32>
    %36 = vector.shape_cast %35 : vector<64xf32> to vector<64x1xf32>
    %cst_20 = arith.constant 3.200000e+01 : f32
    %37 = vector.broadcast %cst_20 : f32 to vector<64x1xf32>
    %38 = arith.divf %36, %37 : vector<64x1xf32>
    %39 = vector.broadcast %38 : vector<64x1xf32> to vector<64x32xf32>
    %40 = arith.subf %31, %39 : vector<64x32xf32>
    %41 = arith.mulf %40, %40 : vector<64x32xf32>
    %cst_21 = arith.constant dense<0.000000e+00> : vector<64xf32>
    %42 = vector.multi_reduction <add>, %41, %cst_21 [1] : vector<64x32xf32> to vector<64xf32>
    %43 = vector.shape_cast %42 : vector<64xf32> to vector<64x1xf32>
    %cst_22 = arith.constant 3.200000e+01 : f32
    %44 = vector.broadcast %cst_22 : f32 to vector<64x1xf32>
    %45 = arith.divf %43, %44 : vector<64x1xf32>
    %46 = vector.broadcast %38 : vector<64x1xf32> to vector<64x32xf32>
    %47 = arith.subf %31, %46 : vector<64x32xf32>
    %cst_23 = arith.constant 9.99999974E-6 : f32
    %48 = vector.broadcast %cst_23 : f32 to vector<64x1xf32>
    %49 = arith.addf %45, %48 : vector<64x1xf32>
    %50 = math.rsqrt %49 : vector<64x1xf32>
    %51 = vector.broadcast %50 : vector<64x1xf32> to vector<64x32xf32>
    %52 = arith.mulf %47, %51 : vector<64x32xf32>
    %53 = vector.broadcast %33 : vector<1x32xf32> to vector<64x32xf32>
    %54 = arith.mulf %52, %53 : vector<64x32xf32>
    %55 = vector.broadcast %34 : vector<1x32xf32> to vector<64x32xf32>
    %56 = arith.addf %54, %55 : vector<64x32xf32>
    %c0_24 = arith.constant 0 : index
    %c0_25 = arith.constant 0 : index
    %57 = vector.load %arg7[%c0_24, %c0_25] : memref<64x32xf32, #tpu.memory_space<vmem>>, vector<64x32xf32>
    tpu.vector_store %arg7[%c0_24, %c0_25], %56 {strides = array<i32>} : memref<64x32xf32, #tpu.memory_space<vmem>>, vector<64x32xf32>,
    return
  }
  func.func @transform_0(%arg0: i32) -> (i32, i32) {
    %c0_i32 = arith.constant 0 : i32
    %c0_i32_0 = arith.constant 0 : i32
    return %arg0, %c0_i32 : i32, i32
  }
  func.func @transform_1(%arg0: i32) -> (i32, i32) {
    %c0_i32 = arith.constant 0 : i32
    %c0_i32_0 = arith.constant 0 : i32
    %c0_i32_1 = arith.constant 0 : i32
    return %c0_i32, %c0_i32_0 : i32, i32
  }
  func.func @transform_2(%arg0: i32) -> (i32, i32) {
    %c0_i32 = arith.constant 0 : i32
    %c0_i32_0 = arith.constant 0 : i32
    %c0_i32_1 = arith.constant 0 : i32
    return %c0_i32, %c0_i32_0 : i32, i32
  }
  func.func @transform_3(%arg0: i32) -> (i32, i32) {
    %c0_i32 = arith.constant 0 : i32
    %c0_i32_0 = arith.constant 0 : i32
    %c0_i32_1 = arith.constant 0 : i32
    return %c0_i32, %c0_i32_0 : i32, i32
  }
  func.func @transform_4(%arg0: i32) -> (i32, i32) {
    %c0_i32 = arith.constant 0 : i32
    %c0_i32_0 = arith.constant 0 : i32
    %c0_i32_1 = arith.constant 0 : i32
    return %c0_i32, %c0_i32_0 : i32, i32
  }
  func.func @transform_5(%arg0: i32) -> (i32, i32) {
    %c0_i32 = arith.constant 0 : i32
    %c0_i32_0 = arith.constant 0 : i32
    return %arg0, %c0_i32 : i32, i32
  }
  func.func @transform_6(%arg0: i32) -> (i32, i32) {
    %c0_i32 = arith.constant 0 : i32
    %c0_i32_0 = arith.constant 0 : i32
    return %arg0, %c0_i32 : i32, i32
  }
}

</mosaic_0001>

<bundles_post_ra>
// kernel: tpu_custom_call.1
= control target key start
LH: loop header
LB: loop body
LE: loop exit
PB: predicated region body
PF: predicated region fallthrough
CT: control target
= control target key end

     0   :  { %s964_s21 = smov 0   ;;  %s1354_s0 = inlined_call_operand.vmem [shape: f32[128,36], index: 0, kind: input, shape index: {}]   ;;  %s1355_s1 = inlined_call_operand.vmem [shape: f32[36,32], index: 1, kind: input, shape index: {}]   ;;  %s1356_s2 = inlined_call_operand.vmem [shape: f32[1,32], index: 2, kind: input, shape index: {}]   ;;  %s1357_s3 = inlined_call_operand.vmem [shape: f32[2,32], index: 3, kind: input, shape index: {}]   ;;  %s1358_s4 = inlined_call_operand.vmem [shape: f32[2,32], index: 4, kind: input, shape index: {}]   ;;  %s1359_s5 = inlined_call_operand.vmem [shape: f32[128,32], index: 5, kind: output, shape index: {0}]   ;;  %s1360_s6 = inlined_call_operand.vmem [shape: f32[128,32], index: 6, kind: output, shape index: {1}]  }
   0x1 LB: > { %s846_s22 = sadd.s32 4294967295, %s926_s21   ;;  %p850_p0 = scmp.ge.s32.totalorder %s926_s21, 1  ;;  %s926_s21 = sphi %s964_s21, %s17_s21  }
   0x2   : > { %p216_p1 = scmp.lt.s32.totalorder %s926_s21, 3 }
   0x4   : > { %p217_p2 = pnand %p850_p0, %p216_p1 }
   0x5   : > { %s851_s25 = sshll.u32 (!%p217_p2), %s846_s22, 3 }
   0x6   : > { %220 = sbr.rel (%p217_p2) target bundleno = 715 (0x2cb), region = 40  ;;  %p252_p3 = scmp.lt.s32.totalorder (!%p217_p2), %s851_s25, 15 }
   0xb   : > { %v282_v0 = vld [vmem:[%s1355_s1 + $0x20] sm:$0xf]  ;;  %vm307_vm0 = vcmask 1041408   ;;  %v280_v2 = vld [vmem:[%s1355_s1 + $0x10] sm:$0xff]  ;;  %v281_v3 = vld [vmem:[%s1355_s1 + $0x18] sm:$0xff]  ;;  %s1364_s25 = smov (!%p252_p3, %s851_s25), 15 }
   0xc   : > { %v289_v1 = vpack.c.bf16 %v282_v0, %v282_v0  ;;  %v288_v5 = vpack.c.bf16 %v281_v3, %v280_v2  ;;  %v278_v6 = vld [vmem:[%s1355_s1] sm:$0xff]  ;;  %v279_v7 = vld [vmem:[%s1355_s1 + $0x8] sm:$0xff]  ;;  %s987_s10 = sshll.u32 %s1364_s25, 3  ;;  %vm294_vm1 = vcmask 293888   ;;  %vm342_vm2 = vcmask 261120  }
   0xd   : > { %s255_s13 = scalar_lea.vmem %s1354_s0, %s987_s10  ;;  %v287_v10 = vpack.c.bf16 %v279_v7, %v278_v6  ;;  %v881_v21 = vld [vmem:[%s1356_s2] ss:$0 sm:$0xff]  ;;  %v928_v46 = vmov 32.0   ;;  %s1110_s23 = scalar_lea.vmem %s1359_s5, %s987_s10 }
   0xe   : > { %v309_v4 = vsel %vm307_vm0, %v289_v1, 0  ;;  %v270_v8 = vld [vmem:[%s255_s13] sm:$0xff]  ;;  %v271_v9 = vld [vmem:[%s255_s13 + $0x8] sm:$0xff]  ;;  %v272_v11 = vld [vmem:[%s255_s13 + $0x10] sm:$0xff]  ;;  %886 = vrcp.f32 %v928_v46  ;;  %s1298_s30 = scalar_lea.vmem %s1360_s6, %s987_s10 }
   0xf   : > { %316 = vmatpush.bf16.msra.mxu0 %v309_v4  ;;  %863 = vmatpush.bf16.msra.mxu1 %v309_v4  ;;  %v273_v12 = vld [vmem:[%s255_s13 + $0x18] sm:$0xff]  ;;  %v274_v13 = vld [vmem:[%s255_s13 + $0x20] sm:$0xff]  ;;  %v275_v14 = vld [vmem:[%s255_s13 + $0x28] sm:$0xff]  ;;  %v283_v17 = vpack.c.bf16 %v271_v9, %v270_v8 }
  0x10   : > { %864 = vmatpush.bf16.msra.mxu2 %v309_v4  ;;  %865 = vmatpush.bf16.msra.mxu3 %v309_v4  ;;  %v276_v15 = vld [vmem:[%s255_s13 + $0x30] sm:$0xff]  ;;  %v277_v16 = vld [vmem:[%s255_s13 + $0x38] sm:$0xff]  ;;  %v284_v18 = vpack.c.bf16 %v273_v12, %v272_v11  ;;  %v285_v19 = vpack.c.bf16 %v275_v14, %v274_v13 }
  0x11   : > { %v286_v20 = vpack.c.bf16 %v277_v16, %v276_v15 }
  0x13   : > { %317 = vmatpush.bf16.msra.mxu0 %v288_v5  ;;  %866 = vmatpush.bf16.msra.mxu1 %v288_v5 }
  0x14   : > { %867 = vmatpush.bf16.msra.mxu2 %v288_v5  ;;  %868 = vmatpush.bf16.msra.mxu3 %v288_v5  ;;  %v887_v47 = vpop.eup %886 }
  0x15   : > { %v368_v48 = vmul.f32 32.0, %v887_v47  ;;  %vm372_vm3 = vweird.f32 %v887_v47 }
  0x17   : > { %318 = vmatpush.bf16.msra.mxu0 %v287_v10  ;;  %869 = vmatpush.bf16.msra.mxu1 %v287_v10  ;;  %v369_v49 = vsub.f32 1.0, %v368_v48 }
  0x18   : > { %870 = vmatpush.bf16.msra.mxu2 %v287_v10  ;;  %871 = vmatpush.bf16.msra.mxu3 %v287_v10 }
  0x19   : > { %v370_v50 = vmul.f32 %v887_v47, %v369_v49 }
  0x1a   : > { %857 = vmatmul.msk.bf16.vlgmr.msra.gmra.mxu0 %vm294_vm1, %v283_v17  ;;  %858 = vmatmul.msk.bf16.vlgmr.msra.gmra.mxu1 %vm294_vm1, %v284_v18 }
  0x1b   : > { %859 = vmatmul.msk.bf16.vlgmr.msra.gmra.mxu2 %vm294_vm1, %v285_v19  ;;  %860 = vmatmul.msk.bf16.vlgmr.msra.gmra.mxu3 %vm294_vm1, %v286_v20  ;;  %v371_v51 = vadd.f32 %v887_v47, %v370_v50 }
  0x1d   : > { %v1004_v52 = vsel %vm372_vm3, %v887_v47, %v371_v51 }
  0x97   : > { %v320_v22 = vpop.f32.mrf.mxu0  ;;  %v325_v23 = vpop.f32.mrf.mxu1 }
  0x98   : > { %v321_v24 = vadd.f32 %v881_v21, %v320_v22  ;;  %v326_v25 = vadd.f32 %v881_v21, %v325_v23 }
  0x9a   : > { %v349_v26 = vsel %vm342_vm2, %v326_v25, 0.0  ;;  %v343_v27 = vsel %vm342_vm2, %v321_v24, 0.0 }
  0x9b   : > { %350 = vadd.xlane.f32.xlu1 %v349_v26  ;;  %344 = vadd.xlane.f32.xlu0 %v343_v27 }
  0x9e   : > { %v330_v28 = vpop.f32.mrf.mxu2  ;;  %v335_v29 = vpop.f32.mrf.mxu3 }
  0x9f   : > { %v331_v30 = vadd.f32 %v881_v21, %v330_v28  ;;  %v322_v31 = vpop.f32.mrf.mxu0  ;;  %v327_v32 = vpop.f32.mrf.mxu1  ;;  %v336_v38 = vadd.f32 %v881_v21, %v335_v29 }
  0xa0   : > { %v323_v33 = vadd.f32 %v881_v21, %v322_v31  ;;  %v328_v34 = vadd.f32 %v881_v21, %v327_v32 }
  0xa1   : > { %v355_v35 = vsel %vm342_vm2, %v331_v30, 0.0  ;;  %v361_v45 = vsel %vm342_vm2, %v336_v38, 0.0 }
  0xa2   : > { %356 = vadd.xlane.f32.xlu2 %v355_v35  ;;  %v352_v36 = vsel %vm342_vm2, %v328_v34, 0.0  ;;  %v346_v37 = vsel %vm342_vm2, %v323_v33, 0.0 }
  0xa3   : > { %353 = vadd.xlane.f32.xlu1 %v352_v36  ;;  %347 = vadd.xlane.f32.xlu0 %v346_v37 }
  0xa6   : > { %v332_v39 = vpop.f32.mrf.mxu2  ;;  %v337_v40 = vpop.f32.mrf.mxu3 }
  0xa7   : > { %v333_v41 = vadd.f32 %v881_v21, %v332_v39  ;;  %v338_v42 = vadd.f32 %v881_v21, %v337_v40 }
  0xa9   : > { %v358_v43 = vsel %vm342_vm2, %v333_v41, 0.0  ;;  %v364_v44 = vsel %vm342_vm2, %v338_v42, 0.0 }
  0xaa   : > { %359 = vadd.xlane.f32.xlu2 %v358_v43 }
  0xab   : > { %365 = vadd.xlane.f32.xlu1 %v364_v44  ;;  %362 = vadd.xlane.f32.xlu0 %v361_v45 }
 0x10e   : > { %v351_v53 = vpop.xlane.xlu1 %350  ;;  %v345_v54 = vpop.xlane.xlu0 %344 }
 0x10f   : > { %v376_v55 = vmul.f32 %v1004_v52, %v351_v53  ;;  %v374_v56 = vmul.f32 %v1004_v52, %v345_v54 }
 0x111   : > { %v1008_v57 = vsub.f32 %v326_v25, %v376_v55  ;;  %v1010_v58 = vsub.f32 %v321_v24, %v374_v56 }
 0x113   : > { %v392_v59 = vmul.f32 %v1008_v57, %v1008_v57  ;;  %v390_v60 = vmul.f32 %v1010_v58, %v1010_v58 }
 0x115   : > { %v357_v61 = vpop.xlane.xlu2 %356  ;;  %v404_v62 = vsel %vm342_vm2, %v392_v59, 0.0  ;;  %v398_v63 = vsel %vm342_vm2, %v390_v60, 0.0 }
 0x116   : > { %v378_v0 = vmul.f32 %v1004_v52, %v357_v61  ;;  %405 = vadd.xlane.f32.xlu1 %v404_v62  ;;  %v354_v1 = vpop.xlane.xlu1 %353  ;;  %399 = vadd.xlane.f32.xlu2 %v398_v63  ;;  %v348_v2 = vpop.xlane.xlu0 %347 }
 0x117   : > { %v377_v3 = vmul.f32 %v1004_v52, %v354_v1  ;;  %v375_v5 = vmul.f32 %v1004_v52, %v348_v2 }
 0x118   : > { %v1020_v4 = vsub.f32 %v331_v30, %v378_v0 }
 0x119   : > { %v1023_v6 = vsub.f32 %v328_v34, %v377_v3  ;;  %v1029_v9 = vsub.f32 %v323_v33, %v375_v5 }
 0x11a   : > { %v394_v7 = vmul.f32 %v1020_v4, %v1020_v4 }
 0x11b   : > { %v393_v8 = vmul.f32 %v1023_v6, %v1023_v6  ;;  %v391_v19 = vmul.f32 %v1029_v9, %v1029_v9 }
 0x11c   : > { %v410_v10 = vsel %vm342_vm2, %v394_v7, 0.0 }
 0x11d   : > { %v360_v11 = vpop.xlane.xlu2 %359  ;;  %411 = vadd.xlane.f32.xlu0 %v410_v10  ;;  %v407_v12 = vsel %vm342_vm2, %v393_v8, 0.0  ;;  %v401_v25 = vsel %vm342_vm2, %v391_v19, 0.0  ;;  %v1087_v8 = vld [vmem:[%s1357_s3] ss:$0 sm:$0xff] }
 0x11e   : > { %v379_v13 = vmul.f32 %v1004_v52, %v360_v11  ;;  %v366_v14 = vpop.xlane.xlu1 %365  ;;  %408 = vadd.xlane.f32.xlu2 %v407_v12  ;;  %v363_v15 = vpop.xlane.xlu0 %362 }
 0x11f   : > { %v380_v16 = vmul.f32 %v1004_v52, %v363_v15  ;;  %v381_v18 = vmul.f32 %v1004_v52, %v366_v14  ;;  %v1094_v15 = vld [vmem:[%s1357_s3 + $0x1] ss:$0 sm:$0xff] }
 0x120   : > { %v1035_v17 = vsub.f32 %v333_v41, %v379_v13 }
 0x121   : > { %v1040_v20 = vsub.f32 %v336_v38, %v380_v16  ;;  %v1046_v23 = vsub.f32 %v338_v42, %v381_v18 }
 0x122   : > { %v395_v21 = vmul.f32 %v1035_v17, %v1035_v17 }
 0x123   : > { %v396_v22 = vmul.f32 %v1040_v20, %v1040_v20  ;;  %v397_v27 = vmul.f32 %v1046_v23, %v1046_v23 }
 0x124   : > { %v413_v24 = vsel %vm342_vm2, %v395_v21, 0.0 }
 0x125   : > { %414 = vadd.xlane.f32.xlu1 %v413_v24  ;;  %402 = vadd.xlane.f32.xlu0 %v401_v25  ;;  %v416_v26 = vsel %vm342_vm2, %v396_v22, 0.0  ;;  %v419_v28 = vsel %vm342_vm2, %v397_v27, 0.0 }
 0x126   : > { %417 = vadd.xlane.f32.xlu2 %v416_v26 }
 0x12d   : > { %420 = vadd.xlane.f32.xlu0 %v419_v28 }
 0x189   : > { %v406_v29 = vpop.xlane.xlu1 %405  ;;  %v400_v30 = vpop.xlane.xlu2 %399 }
 0x18a   : > { %v424_v31 = vmul.f32 %v406_v29, %v1004_v52  ;;  %v422_v32 = vmul.f32 %v400_v30, %v1004_v52 }
 0x18c   : > { %v432_v33 = vadd.f32 1e-05, %v424_v31  ;;  %v430_v34 = vadd.f32 1e-05, %v422_v32 }
 0x18e   : > { %888 = vrsqrt.f32 %v432_v33  ;;  %vm464_vm6 = vweird.f32 %v432_v33  ;;  %vm444_vm8 = vweird.f32 %v430_v34 }
 0x18f   : > { %890 = vrsqrt.f32 %v430_v34 }
 0x190   : > { %v412_v35 = vpop.xlane.xlu0 %411 }
 0x191   : > { %v426_v36 = vmul.f32 %v412_v35, %v1004_v52  ;;  %v409_v37 = vpop.xlane.xlu2 %408 }
 0x192   : > { %v425_v38 = vmul.f32 %v409_v37, %v1004_v52 }
 0x193   : > { %v1058_v39 = vadd.f32 1e-05, %v426_v36 }
 0x194   : > { %v889_v40 = vpop.eup %888  ;;  %v1060_v41 = vadd.f32 1e-05, %v425_v38 }
 0x195   : > { %v891_v42 = vpop.eup %890  ;;  %v459_v43 = vmul.f32 %v889_v40, %v432_v33  ;;  %892 = vrsqrt.f32 %v1058_v39  ;;  %vm465_vm4 = vweird.f32 %v889_v40  ;;  %vm484_vm12 = vweird.f32 %v1058_v39 }
 0x196   : > { %v439_v44 = vmul.f32 %v891_v42, %v430_v34  ;;  %894 = vrsqrt.f32 %v1060_v41  ;;  %vm445_vm5 = vweird.f32 %v891_v42  ;;  %vm466_vm7 = vmor %vm464_vm6, %vm465_vm4  ;;  %vm474_vm14 = vweird.f32 %v1060_v41 }
 0x197   : > { %v460_v45 = vmul.f32 %v889_v40, %v459_v43  ;;  %vm446_vm9 = vmor %vm444_vm8, %vm445_vm5 }
 0x198   : > { %v440_v46 = vmul.f32 %v891_v42, %v439_v44  ;;  %v415_v47 = vpop.xlane.xlu1 %414  ;;  %v403_v48 = vpop.xlane.xlu0 %402 }
 0x199   : > { %v461_v49 = vmul.f32 0.5, %v460_v45  ;;  %v427_v50 = vmul.f32 %v415_v47, %v1004_v52  ;;  %v423_v51 = vmul.f32 %v403_v48, %v1004_v52  ;;  %v418_v53 = vpop.xlane.xlu2 %417 }
 0x19a   : > { %v441_v54 = vmul.f32 0.5, %v440_v46  ;;  %v428_v55 = vmul.f32 %v418_v53, %v1004_v52 }
 0x19b   : > { %v1067_v56 = vpop.eup %892  ;;  %v462_v59 = vsub.f32 1.5, %v461_v49  ;;  %v1069_v60 = vadd.f32 1e-05, %v427_v50  ;;  %v1071_v61 = vadd.f32 1e-05, %v423_v51 }
 0x19c   : > { %v1073_v62 = vpop.eup %894  ;;  %v442_v63 = vsub.f32 1.5, %v441_v54  ;;  %v479_v0 = vmul.f32 %v1067_v56, %v1058_v39  ;;  %v1077_v1 = vadd.f32 1e-05, %v428_v55  ;;  %vm485_vm10 = vweird.f32 %v1067_v56 }
 0x19d   : > { %v463_v2 = vmul.f32 %v889_v40, %v462_v59  ;;  %v469_v3 = vmul.f32 %v1073_v62, %v1060_v41  ;;  %896 = vrsqrt.f32 %v1069_v60  ;;  %vm475_vm11 = vweird.f32 %v1073_v62  ;;  %vm1122_vm13 = vmor %vm484_vm12, %vm485_vm10 }
 0x19e   : > { %v443_v5 = vmul.f32 %v891_v42, %v442_v63  ;;  %v480_v7 = vmul.f32 %v1067_v56, %v479_v0  ;;  %898 = vrsqrt.f32 %v1071_v61  ;;  %vm476_vm15 = vmor %vm474_vm14, %vm475_vm11  ;;  %vm494_vm1 = vweird.f32 %v1069_v60 }
 0x19f   : > { %v467_v10 = vsel %vm466_vm7, %v889_v40, %v463_v2  ;;  %v470_v11 = vmul.f32 %v1073_v62, %v469_v3  ;;  %900 = vrsqrt.f32 %v1077_v1  ;;  %vm454_vm6 = vweird.f32 %v1071_v61 }
 0x1a0   : > { %v447_v12 = vsel %vm446_vm9, %v891_v42, %v443_v5  ;;  %v481_v13 = vmul.f32 0.5, %v480_v7  ;;  %v421_v14 = vpop.xlane.xlu0 %420  ;;  %v520_v16 = vmul.f32 %v467_v10, %v1008_v57  ;;  %vm504_vm8 = vweird.f32 %v1077_v1 }
 0x1a1   : > { %v471_v18 = vmul.f32 0.5, %v470_v11  ;;  %v429_v19 = vmul.f32 %v421_v14, %v1004_v52  ;;  %v518_v21 = vmul.f32 %v447_v12, %v1010_v58 }
 0x1a2   : > { %v482_v22 = vsub.f32 1.5, %v481_v13  ;;  %v529_v24 = vmul.f32 %v1087_v8, %v520_v16 }
 0x1a3   : > { %v1101_v25 = vpop.eup %896  ;;  %v472_v26 = vsub.f32 1.5, %v471_v18  ;;  %v1104_v27 = vadd.f32 1e-05, %v429_v19  ;;  %v527_v57 = vmul.f32 %v1087_v8, %v518_v21 }
 0x1a4   : > { %v1113_v58 = vpop.eup %898  ;;  %v483_v28 = vmul.f32 %v1067_v56, %v482_v22  ;;  %v489_v29 = vmul.f32 %v1101_v25, %v1069_v60  ;;  %v1120_v30 = vadd.f32 %v1094_v15, %v529_v24  ;;  %vm495_vm0 = vweird.f32 %v1101_v25 }
 0x1a5   : > { %v901_v31 = vpop.eup %900  ;;  %v473_v33 = vmul.f32 %v1073_v62, %v472_v26  ;;  %v449_v34 = vmul.f32 %v1113_v58, %v1071_v61  ;;  %902 = vrsqrt.f32 %v1104_v27  ;;  %v1144_v40 = vadd.f32 %v1094_v15, %v527_v57  ;;  %vm496_vm5 = vmor %vm494_vm1, %vm495_vm0 }
 0x1a6   : > { %v487_v35 = vsel %vm1122_vm13, %v1067_v56, %v483_v28  ;;  %v490_v36 = vmul.f32 %v1101_v25, %v489_v29  ;;  %v499_v37 = vmul.f32 %v901_v31, %v1077_v1  ;;  %546 = vst.msk [vmem:[%s1110_s23 + $0x10] sm:$0xff] %vm342_vm2, %v1120_v30  ;;  %v560_v43 = vsel %vm342_vm2, %v1120_v30, 0.0 }
 0x1a7   : > { %v477_v38 = vsel %vm476_vm15, %v1073_v62, %v473_v33  ;;  %v450_v39 = vmul.f32 %v1113_v58, %v449_v34  ;;  %v522_v44 = vmul.f32 %v487_v35, %v1020_v4  ;;  %v554_v46 = vsel %vm342_vm2, %v1144_v40, 0.0  ;;  %544 = vst.msk [vmem:[%s1110_s23] sm:$0xff] %vm342_vm2, %v1144_v40  ;;  %561 = vadd.xlane.f32.xlu0 %v560_v43 }
 0x1a8   : > { %v491_v41 = vmul.f32 0.5, %v490_v36  ;;  %v500_v42 = vmul.f32 %v901_v31, %v499_v37  ;;  %v521_v47 = vmul.f32 %v477_v38, %v1023_v6  ;;  %555 = vadd.xlane.f32.xlu1 %v554_v46  ;;  %vm455_vm3 = vweird.f32 %v1113_v58 }
 0x1a9   : > { %v451_v45 = vmul.f32 0.5, %v450_v39  ;;  %v531_v50 = vmul.f32 %v1087_v8, %v522_v44  ;;  %vm505_vm4 = vweird.f32 %v901_v31  ;;  %vm456_vm7 = vmor %vm454_vm6, %vm455_vm3  ;;  %vm514_vm11 = vweird.f32 %v1104_v27 }
 0x1aa   : > { %v492_v48 = vsub.f32 1.5, %v491_v41  ;;  %v501_v49 = vmul.f32 0.5, %v500_v42  ;;  %v530_v53 = vmul.f32 %v1087_v8, %v521_v47  ;;  %vm506_vm9 = vmor %vm504_vm8, %vm505_vm4 }
 0x1ab   : > { %v903_v51 = vpop.eup %902  ;;  %v452_v4 = vsub.f32 1.5, %v451_v45  ;;  %v540_v59 = vadd.f32 %v1094_v15, %v531_v50 }
 0x1ac   : > { %v493_v54 = vmul.f32 %v1101_v25, %v492_v48  ;;  %v502_v55 = vsub.f32 1.5, %v501_v49  ;;  %v509_v6 = vmul.f32 %v903_v51, %v1104_v27  ;;  %v1166_v60 = vadd.f32 %v1094_v15, %v530_v53 }
 0x1ad   : > { %v453_v56 = vmul.f32 %v1113_v58, %v452_v4  ;;  %v566_v3 = vsel %vm342_vm2, %v540_v59, 0.0  ;;  %548 = vst.msk [vmem:[%s1110_s23 + $0x20] sm:$0xff] %vm342_vm2, %v540_v59  ;;  %vm515_vm10 = vweird.f32 %v903_v51 }
 0x1ae   : > { %v497_v62 = vsel %vm496_vm5, %v1101_v25, %v493_v54  ;;  %v503_v63 = vmul.f32 %v901_v31, %v502_v55  ;;  %v510_v0 = vmul.f32 %v903_v51, %v509_v6  ;;  %v563_v61 = vsel %vm342_vm2, %v1166_v60, 0.0  ;;  %567 = vadd.xlane.f32.xlu2 %v566_v3  ;;  %547 = vst.msk [vmem:[%s1110_s23 + $0x18] sm:$0xff] %vm342_vm2, %v1166_v60  ;;  %vm516_vm12 = vmor %vm514_vm11, %vm515_vm10 }
 0x1af   : > { %v457_v2 = vsel %vm456_vm7, %v1113_v58, %v453_v56  ;;  %v523_v5 = vmul.f32 %v497_v62, %v1035_v17 }
 0x1b0   : > { %v507_v7 = vsel %vm506_vm9, %v901_v31, %v503_v63  ;;  %v511_v10 = vmul.f32 0.5, %v510_v0  ;;  %v519_v1 = vmul.f32 %v457_v2, %v1029_v9  ;;  %564 = vadd.xlane.f32.xlu1 %v563_v61 }
 0x1b1   : > { %v532_v11 = vmul.f32 %v1087_v8, %v523_v5  ;;  %v524_v12 = vmul.f32 %v507_v7, %v1040_v20 }
 0x1b2   : > { %v512_v13 = vsub.f32 1.5, %v511_v10  ;;  %v528_v17 = vmul.f32 %v1087_v8, %v519_v1 }
 0x1b3   : > { %v541_v14 = vadd.f32 %v1094_v15, %v532_v11  ;;  %v533_v16 = vmul.f32 %v1087_v8, %v524_v12 }
 0x1b4   : > { %v513_v18 = vmul.f32 %v903_v51, %v512_v13  ;;  %v537_v9 = vadd.f32 %v1094_v15, %v528_v17 }
 0x1b5   : > { %549 = vst.msk [vmem:[%s1110_s23 + $0x28] sm:$0xff] %vm342_vm2, %v541_v14  ;;  %v569_v20 = vsel %vm342_vm2, %v541_v14, 0.0  ;;  %v542_v19 = vadd.f32 %v1094_v15, %v533_v16 }
 0x1b6   : > { %v517_v21 = vsel %vm516_vm12, %v903_v51, %v513_v18  ;;  %570 = vadd.xlane.f32.xlu0 %v569_v20  ;;  %v557_v22 = vsel %vm342_vm2, %v537_v9, 0.0  ;;  %545 = vst.msk [vmem:[%s1110_s23 + $0x8] sm:$0xff] %vm342_vm2, %v537_v9 }
 0x1b7   : > { %v572_v24 = vsel %vm342_vm2, %v542_v19, 0.0  ;;  %550 = vst.msk [vmem:[%s1110_s23 + $0x30] sm:$0xff] %vm342_vm2, %v542_v19  ;;  %v525_v25 = vmul.f32 %v517_v21, %v1046_v23  ;;  %558 = vadd.xlane.f32.xlu2 %v557_v22 }
 0x1b8   : > { %573 = vadd.xlane.f32.xlu1 %v572_v24 }
 0x1b9   : > { %v534_v26 = vmul.f32 %v1087_v8, %v525_v25 }
 0x1bb   : > { %v543_v27 = vadd.f32 %v1094_v15, %v534_v26 }
 0x1bd   : > { %v575_v57 = vsel %vm342_vm2, %v543_v27, 0.0  ;;  %551 = vst.msk [vmem:[%s1110_s23 + $0x38] sm:$0xff] %vm342_vm2, %v543_v27 }
 0x1bf   : > { %576 = vadd.xlane.f32.xlu2 %v575_v57 }
 0x21a   : > { %v562_v58 = vpop.xlane.xlu0 %561 }
 0x21b   : > { %v556_v28 = vpop.xlane.xlu1 %555  ;;  %v580_v29 = vmul.f32 %v562_v58, %v1004_v52 }
 0x21c   : > { %v578_v31 = vmul.f32 %v556_v28, %v1004_v52 }
 0x21d   : > { %v1207_v32 = vsub.f32 %v1120_v30, %v580_v29 }
 0x21e   : > { %v1210_v23 = vsub.f32 %v1144_v40, %v578_v31 }
 0x21f   : > { %v596_v8 = vmul.f32 %v1207_v32, %v1207_v32 }
 0x220   : > { %v594_v15 = vmul.f32 %v1210_v23, %v1210_v23 }
 0x221   : > { %v568_v33 = vpop.xlane.xlu2 %567  ;;  %v608_v34 = vsel %vm342_vm2, %v596_v8, 0.0 }
 0x222   : > { %v582_v35 = vmul.f32 %v568_v33, %v1004_v52  ;;  %v602_v36 = vsel %vm342_vm2, %v594_v15, 0.0  ;;  %609 = vadd.xlane.f32.xlu2 %v608_v34 }
 0x223   : > { %v565_v37 = vpop.xlane.xlu1 %564  ;;  %603 = vadd.xlane.f32.xlu0 %v602_v36 }
 0x224   : > { %v1219_v30 = vsub.f32 %v540_v59, %v582_v35  ;;  %v581_v38 = vmul.f32 %v565_v37, %v1004_v52 }
 0x226   : > { %v1223_v39 = vsub.f32 %v1166_v60, %v581_v38  ;;  %v598_v40 = vmul.f32 %v1219_v30, %v1219_v30  ;;  %v1278_v38 = vld [vmem:[%s1358_s4] ss:$0 sm:$0xff] }
 0x228   : > { %v614_v42 = vsel %vm342_vm2, %v598_v40, 0.0  ;;  %v597_v44 = vmul.f32 %v1223_v39, %v1223_v39 }
 0x229   : > { %v571_v41 = vpop.xlane.xlu0 %570  ;;  %615 = vadd.xlane.f32.xlu1 %v614_v42 }
 0x22a   : > { %v583_v43 = vmul.f32 %v571_v41, %v1004_v52  ;;  %v559_v45 = vpop.xlane.xlu2 %558  ;;  %v611_v48 = vsel %vm342_vm2, %v597_v44, 0.0 }
 0x22b   : > { %v579_v46 = vmul.f32 %v559_v45, %v1004_v52  ;;  %612 = vadd.xlane.f32.xlu0 %v611_v48  ;;  %v574_v49 = vpop.xlane.xlu1 %573  ;;  %v1286_v45 = vld [vmem:[%s1358_s4 + $0x1] ss:$0 sm:$0xff] }
 0x22c   : > { %v1232_v47 = vsub.f32 %v541_v14, %v583_v43  ;;  %v584_v51 = vmul.f32 %v574_v49, %v1004_v52 }
 0x22d   : > { %v1235_v50 = vsub.f32 %v537_v9, %v579_v46 }
 0x22e   : > { %v599_v4 = vmul.f32 %v1232_v47, %v1232_v47  ;;  %v1240_v53 = vsub.f32 %v542_v19, %v584_v51 }
 0x22f   : > { %v595_v54 = vmul.f32 %v1235_v50, %v1235_v50 }
 0x230   : > { %v617_v55 = vsel %vm342_vm2, %v599_v4, 0.0  ;;  %v600_v56 = vmul.f32 %v1240_v53, %v1240_v53 }
 0x231   : > { %618 = vadd.xlane.f32.xlu2 %v617_v55  ;;  %v605_v6 = vsel %vm342_vm2, %v595_v54, 0.0 }
 0x232   : > { %606 = vadd.xlane.f32.xlu1 %v605_v6  ;;  %v577_v59 = vpop.xlane.xlu2 %576  ;;  %v620_v62 = vsel %vm342_vm2, %v600_v56, 0.0 }
 0x233   : > { %v585_v60 = vmul.f32 %v577_v59, %v1004_v52  ;;  %621 = vadd.xlane.f32.xlu0 %v620_v62 }
 0x235   : > { %v1250_v63 = vsub.f32 %v543_v27, %v585_v60 }
 0x237   : > { %v601_v0 = vmul.f32 %v1250_v63, %v1250_v63 }
 0x239   : > { %v623_v2 = vsel %vm342_vm2, %v601_v0, 0.0 }
 0x23a   : > { %624 = vadd.xlane.f32.xlu1 %v623_v2 }
 0x295   : > { %v610_v3 = vpop.xlane.xlu2 %609 }
 0x296   : > { %v628_v61 = vmul.f32 %v610_v3, %v1004_v52  ;;  %v604_v5 = vpop.xlane.xlu0 %603 }
 0x297   : > { %v626_v7 = vmul.f32 %v604_v5, %v1004_v52 }
 0x298   : > { %v636_v10 = vadd.f32 1e-05, %v628_v61 }
 0x299   : > { %v634_v1 = vadd.f32 1e-05, %v626_v7 }
 0x29a   : > { %904 = vrsqrt.f32 %v636_v10  ;;  %vm668_vm15 = vweird.f32 %v636_v10 }
 0x29b   : > { %906 = vrsqrt.f32 %v634_v1  ;;  %vm648_vm1 = vweird.f32 %v634_v1 }
 0x29c   : > { %v616_v11 = vpop.xlane.xlu1 %615 }
 0x29d   : > { %v630_v12 = vmul.f32 %v616_v11, %v1004_v52 }
 0x29e   : > { %v613_v13 = vpop.xlane.xlu0 %612 }
 0x29f   : > { %v1258_v17 = vadd.f32 1e-05, %v630_v12  ;;  %v629_v14 = vmul.f32 %v613_v13, %v1004_v52 }
 0x2a0   : > { %v905_v16 = vpop.eup %904 }
 0x2a1   : > { %v907_v18 = vpop.eup %906  ;;  %v663_v9 = vmul.f32 %v905_v16, %v636_v10  ;;  %908 = vrsqrt.f32 %v1258_v17  ;;  %v1262_v19 = vadd.f32 1e-05, %v629_v14  ;;  %vm669_vm13 = vweird.f32 %v905_v16 }
 0x2a2   : > { %v643_v20 = vmul.f32 %v907_v18, %v634_v1  ;;  %vm649_vm14 = vweird.f32 %v907_v18  ;;  %vm670_vm0 = vmor %vm668_vm15, %vm669_vm13  ;;  %vm688_vm5 = vweird.f32 %v1258_v17 }
 0x2a3   : > { %v664_v22 = vmul.f32 %v905_v16, %v663_v9  ;;  %910 = vrsqrt.f32 %v1262_v19  ;;  %vm650_vm3 = vmor %vm648_vm1, %vm649_vm14  ;;  %vm678_vm8 = vweird.f32 %v1262_v19 }
 0x2a4   : > { %v619_v21 = vpop.xlane.xlu2 %618  ;;  %v644_v25 = vmul.f32 %v907_v18, %v643_v20 }
 0x2a5   : > { %v631_v24 = vmul.f32 %v619_v21, %v1004_v52  ;;  %v607_v26 = vpop.xlane.xlu1 %606  ;;  %v665_v27 = vmul.f32 0.5, %v664_v22 }
 0x2a6   : > { %v627_v57 = vmul.f32 %v607_v26, %v1004_v52  ;;  %v645_v28 = vmul.f32 0.5, %v644_v25  ;;  %v622_v29 = vpop.xlane.xlu0 %621 }
 0x2a7   : > { %v1267_v58 = vadd.f32 1e-05, %v631_v24  ;;  %v909_v31 = vpop.eup %908  ;;  %v666_v8 = vsub.f32 1.5, %v665_v27  ;;  %v632_v35 = vmul.f32 %v622_v29, %v1004_v52 }
 0x2a8   : > { %v1269_v15 = vadd.f32 1e-05, %v627_v57  ;;  %v646_v33 = vsub.f32 1.5, %v645_v28  ;;  %v683_v34 = vmul.f32 %v909_v31, %v1258_v17  ;;  %vm689_vm4 = vweird.f32 %v909_v31 }
 0x2a9   : > { %912 = vrsqrt.f32 %v1267_v58  ;;  %v667_v36 = vmul.f32 %v905_v16, %v666_v8  ;;  %v911_v37 = vpop.eup %910  ;;  %v1280_v42 = vadd.f32 1e-05, %v632_v35  ;;  %vm690_vm7 = vmor %vm688_vm5, %vm689_vm4  ;;  %vm698_vm12 = vweird.f32 %v1267_v58 }
 0x2aa   : > { %914 = vrsqrt.f32 %v1269_v15  ;;  %v647_v40 = vmul.f32 %v907_v18, %v646_v33  ;;  %v684_v41 = vmul.f32 %v909_v31, %v683_v34  ;;  %v673_v44 = vmul.f32 %v911_v37, %v1262_v19 }
 0x2ab   : > { %v671_v43 = vsel %vm670_vm0, %v905_v16, %v667_v36  ;;  %916 = vrsqrt.f32 %v1280_v42  ;;  %vm679_vm6 = vweird.f32 %v911_v37  ;;  %vm658_vm13 = vweird.f32 %v1269_v15 }
 0x2ac   : > { %v724_v46 = vmul.f32 %v671_v43, %v1207_v32  ;;  %v651_v48 = vsel %vm650_vm3, %v907_v18, %v647_v40  ;;  %v685_v49 = vmul.f32 0.5, %v684_v41  ;;  %v674_v55 = vmul.f32 %v911_v37, %v673_v44  ;;  %vm680_vm9 = vmor %vm678_vm8, %vm679_vm6 }
 0x2ad   : > { %v625_v51 = vpop.xlane.xlu1 %624  ;;  %v722_v54 = vmul.f32 %v651_v48, %v1210_v23  ;;  %vm708_vm1 = vweird.f32 %v1280_v42 }
 0x2ae   : > { %v633_v6 = vmul.f32 %v625_v51, %v1004_v52  ;;  %v733_v56 = vmul.f32 %v1278_v38, %v724_v46  ;;  %v686_v59 = vsub.f32 1.5, %v685_v49  ;;  %v675_v23 = vmul.f32 0.5, %v674_v55 }
 0x2af   : > { %v913_v4 = vpop.eup %912  ;;  %v731_v32 = vmul.f32 %v1278_v38, %v722_v54 }
 0x2b0   : > { %v693_v60 = vmul.f32 %v913_v4, %v1267_v58  ;;  %v915_v62 = vpop.eup %914  ;;  %v1302_v52 = vadd.f32 1e-05, %v633_v6  ;;  %v742_v0 = vadd.f32 %v1286_v45, %v733_v56  ;;  %v687_v2 = vmul.f32 %v909_v31, %v686_v59 }
 0x2b1   : > { %v653_v3 = vmul.f32 %v915_v62, %v1269_v15  ;;  %v740_v61 = vadd.f32 %v1286_v45, %v731_v32  ;;  %v676_v5 = vsub.f32 1.5, %v675_v23  ;;  %v917_v10 = vpop.eup %916  ;;  %vm699_vm10 = vweird.f32 %v913_v4 }
 0x2b2   : > { %v694_v7 = vmul.f32 %v913_v4, %v693_v60  ;;  %918 = vrsqrt.f32 %v1302_v52  ;;  %750 = vst.msk [vmem:[%s1298_s30 + $0x10] sm:$0xff] %vm342_vm2, %v742_v0  ;;  %v691_v1 = vsel %vm690_vm7, %v909_v31, %v687_v2  ;;  %v703_v14 = vmul.f32 %v917_v10, %v1280_v42  ;;  %vm700_vm14 = vmor %vm698_vm12, %vm699_vm10 }
 0x2b3   : > { %v654_v11 = vmul.f32 %v915_v62, %v653_v3  ;;  %748 = vst.msk [vmem:[%s1298_s30] sm:$0xff] %vm342_vm2, %v740_v61  ;;  %v726_v12 = vmul.f32 %v691_v1, %v1219_v30  ;;  %v677_v13 = vmul.f32 %v911_v37, %v676_v5  ;;  %vm659_vm11 = vweird.f32 %v915_v62 }
 0x2b4   : > { %v695_v17 = vmul.f32 0.5, %v694_v7  ;;  %v704_v21 = vmul.f32 %v917_v10, %v703_v14  ;;  %vm660_vm15 = vmor %vm658_vm13, %vm659_vm11  ;;  %vm709_vm0 = vweird.f32 %v917_v10  ;;  %vm718_vm5 = vweird.f32 %v1302_v52 }
 0x2b5   : > { %v655_v16 = vmul.f32 0.5, %v654_v11  ;;  %v735_v18 = vmul.f32 %v1278_v38, %v726_v12  ;;  %v681_v9 = vsel %vm680_vm9, %v911_v37, %v677_v13  ;;  %vm710_vm3 = vmor %vm708_vm1, %vm709_vm0 }
 0x2b6   : > { %v696_v20 = vsub.f32 1.5, %v695_v17  ;;  %v725_v19 = vmul.f32 %v681_v9, %v1223_v39  ;;  %v705_v26 = vmul.f32 0.5, %v704_v21 }
 0x2b7   : > { %v656_v22 = vsub.f32 1.5, %v655_v16  ;;  %v744_v30 = vadd.f32 %v1286_v45, %v735_v18 }
 0x2b8   : > { %v919_v24 = vpop.eup %918  ;;  %v697_v25 = vmul.f32 %v913_v4, %v696_v20  ;;  %v734_v27 = vmul.f32 %v1278_v38, %v725_v19  ;;  %v706_v29 = vsub.f32 1.5, %v705_v26 }
 0x2b9   : > { %v657_v57 = vmul.f32 %v915_v62, %v656_v22  ;;  %v713_v28 = vmul.f32 %v919_v24, %v1302_v52  ;;  %752 = vst.msk [vmem:[%s1298_s30 + $0x20] sm:$0xff] %vm342_vm2, %v744_v30  ;;  %vm719_vm4 = vweird.f32 %v919_v24 }
 0x2ba   : > { %v701_v39 = vsel %vm700_vm14, %v913_v4, %v697_v25  ;;  %v743_v31 = vadd.f32 %v1286_v45, %v734_v27  ;;  %v707_v15 = vmul.f32 %v917_v10, %v706_v29  ;;  %vm720_vm6 = vmor %vm718_vm5, %vm719_vm4 }
 0x2bb   : > { %v661_v58 = vsel %vm660_vm15, %v915_v62, %v657_v57  ;;  %v727_v8 = vmul.f32 %v701_v39, %v1232_v47  ;;  %v714_v33 = vmul.f32 %v919_v24, %v713_v28 }
 0x2bc   : > { %v723_v34 = vmul.f32 %v661_v58, %v1235_v50  ;;  %751 = vst.msk [vmem:[%s1298_s30 + $0x18] sm:$0xff] %vm342_vm2, %v743_v31  ;;  %v711_v40 = vsel %vm710_vm3, %v917_v10, %v707_v15 }
 0x2bd   : > { %v736_v35 = vmul.f32 %v1278_v38, %v727_v8  ;;  %v715_v36 = vmul.f32 0.5, %v714_v33  ;;  %v728_v41 = vmul.f32 %v711_v40, %v1240_v53 }
 0x2be   : > { %v732_v37 = vmul.f32 %v1278_v38, %v723_v34 }
 0x2bf   : > { %v745_v47 = vadd.f32 %v1286_v45, %v736_v35  ;;  %v716_v50 = vsub.f32 1.5, %v715_v36  ;;  %v737_v43 = vmul.f32 %v1278_v38, %v728_v41 }
 0x2c0   : > { %v741_v42 = vadd.f32 %v1286_v45, %v732_v37 }
 0x2c1   : > { %753 = vst.msk [vmem:[%s1298_s30 + $0x28] sm:$0xff] %vm342_vm2, %v745_v47  ;;  %v717_v44 = vmul.f32 %v919_v24, %v716_v50  ;;  %v746_v46 = vadd.f32 %v1286_v45, %v737_v43 }
 0x2c2   : > { %749 = vst.msk [vmem:[%s1298_s30 + $0x8] sm:$0xff] %vm342_vm2, %v741_v42 }
 0x2c3   : > { %v721_v48 = vsel %vm720_vm6, %v919_v24, %v717_v44  ;;  %754 = vst.msk [vmem:[%s1298_s30 + $0x30] sm:$0xff] %vm342_vm2, %v746_v46 }
 0x2c4   : > { %v729_v53 = vmul.f32 %v721_v48, %v1250_v63 }
 0x2c6   : > { %v738_v49 = vmul.f32 %v1278_v38, %v729_v53 }
 0x2c8   : > { %v747_v51 = vadd.f32 %v1286_v45, %v738_v49 }
 0x2ca   : > { %755 = vst.msk [vmem:[%s1298_s30 + $0x38] sm:$0xff] %vm342_vm2, %v747_v51 }
 0x2cb PF: > { %s17_s21 = sadd.s32 1, %s926_s21  }
 0x2cc   : > { %p14_p4 = scmp.ge.s32.totalorder %s17_s21, 4  }
 0x2ce   :  { %16 = sbr.rel (!%p14_p4) target bundleno = 1 (0x1), region = 82 }

</bundles_post_ra>
